<compile_context>
chip_gen: v7x
topology: tpu7x:2x2x1
jax: 0.10.0
libtpu: 0.0.40
codegen_flags: <defaults>
</compile_context>

<pallas_src>
import functools

import jax
import jax.numpy as jnp
import numpy as np
from jax.experimental import pallas as pl
from jax.experimental.pallas import tpu as pltpu


# ----------------------------------------------------------------------------
# Fused MLP kernel: one batch tile through all four Linear(+ReLU) layers.
# ----------------------------------------------------------------------------
def _mlp_kernel(x_ref, w1_ref, b1_ref, w2_ref, b2_ref, w3_ref, b3_ref,
                w4_ref, b4_ref, o_ref):
    h = jnp.dot(x_ref[...], w1_ref[...], preferred_element_type=jnp.float32)
    h = jnp.maximum(h + b1_ref[...], 0.0)

    h = jnp.dot(h, w2_ref[...], preferred_element_type=jnp.float32)
    h = jnp.maximum(h + b2_ref[...], 0.0)

    h = jnp.dot(h, w3_ref[...], preferred_element_type=jnp.float32)
    h = jnp.maximum(h + b3_ref[...], 0.0)

    out = jnp.dot(h, w4_ref[...], preferred_element_type=jnp.float32)
    o_ref[...] = out + b4_ref[...]


def _round_up(x, m):
    return ((x + m - 1) // m) * m


def mlp_forward_pallas(params, x):
    """Fused 4-layer MLP head. x: [B, input_size] -> logits [B, n_classes]."""
    m, d_in = x.shape
    d_h1 = params["w1"].shape[1]          # 128
    d_h2 = params["w2"].shape[1]          # 256
    d_h3 = params["w3"].shape[1]          # 128
    d_out = params["w4"].shape[1]         # n_classes

    # Lane-dense padding: contraction and output dims -> multiples of 128.
    d_in_p = _round_up(d_in, 128)
    d_out_p = _round_up(d_out, 128)

    # Batch tiling: pad to sublane multiple of 8; tile at up to 128 rows so
    # larger batches give multiple "parallel" grid steps (v7x dual-TC).
    tm = 128
    m_p = _round_up(m, 8)
    if m_p < tm:
        tm = m_p
    else:
        m_p = _round_up(m, tm)
    n_tiles = m_p // tm

    # Zero-pad inputs / weights (zeros contribute nothing to the matmuls).
    x_p = jnp.pad(x, ((0, m_p - m), (0, d_in_p - d_in)))
    w1 = jnp.pad(params["w1"], ((0, d_in_p - d_in), (0, 0)))
    w2 = params["w2"]
    w3 = params["w3"]
    w4 = jnp.pad(params["w4"], ((0, 0), (0, d_out_p - d_out)))
    b1 = params["b1"].reshape(1, d_h1)
    b2 = params["b2"].reshape(1, d_h2)
    b3 = params["b3"].reshape(1, d_h3)
    b4 = jnp.pad(params["b4"], (0, d_out_p - d_out)).reshape(1, d_out_p)

    out_p = pl.pallas_call(
        _mlp_kernel,
        out_shape=jax.ShapeDtypeStruct((m_p, d_out_p), jnp.float32),
        grid_spec=pl.GridSpec(
            grid=(n_tiles,),
            in_specs=[
                pl.BlockSpec((tm, d_in_p), lambda i: (i, 0)),
                pl.BlockSpec((d_in_p, d_h1), lambda i: (0, 0)),
                pl.BlockSpec((1, d_h1), lambda i: (0, 0)),
                pl.BlockSpec((d_h1, d_h2), lambda i: (0, 0)),
                pl.BlockSpec((1, d_h2), lambda i: (0, 0)),
                pl.BlockSpec((d_h2, d_h3), lambda i: (0, 0)),
                pl.BlockSpec((1, d_h3), lambda i: (0, 0)),
                pl.BlockSpec((d_h3, d_out_p), lambda i: (0, 0)),
                pl.BlockSpec((1, d_out_p), lambda i: (0, 0)),
            ],
            out_specs=pl.BlockSpec((tm, d_out_p), lambda i: (i, 0)),
        ),
        compiler_params=pltpu.CompilerParams(
            dimension_semantics=("parallel",),
        ),
    )(x_p, w1, b1, w2, b2, w3, b3, w4, b4)

    return out_p[:m, :d_out]


# ----------------------------------------------------------------------------
# Parameters (matches nn.Sequential(Linear, ReLU, Linear, ReLU, Linear, ReLU, Linear))
# ----------------------------------------------------------------------------
def init_params(key, input_size, n_classes):
    dims = [(input_size, 128), (128, 256), (256, 128), (128, n_classes)]
    keys = jax.random.split(key, len(dims))
    params = {}
    for idx, ((din, dout), k) in enumerate(zip(dims, keys), start=1):
        bound = 1.0 / np.sqrt(din)   # PyTorch Linear default init range
        kw, kb = jax.random.split(k)
        params[f"w{idx}"] = jax.random.uniform(
            kw, (din, dout), jnp.float32, minval=-bound, maxval=bound)
        params[f"b{idx}"] = jax.random.uniform(
            kb, (dout,), jnp.float32, minval=-bound, maxval=bound)
    return params


@jax.jit
def forward(params, image):
    """Equivalent of decision_maker_logit.forward({'image': x})['prediction']."""
    return mlp_forward_pallas(params, image)


def forward_dict(params, input_dict):
    return {"prediction": forward(params, input_dict["image"])}


# ----------------------------------------------------------------------------
# Pure-JAX reference for correctness check
# ----------------------------------------------------------------------------
def reference_forward(params, x):
    h = jnp.maximum(x @ params["w1"] + params["b1"], 0.0)
    h = jnp.maximum(h @ params["w2"] + params["b2"], 0.0)
    h = jnp.maximum(h @ params["w3"] + params["b3"], 0.0)
    return h @ params["w4"] + params["b4"]


if __name__ == "__main__":
    key = jax.random.PRNGKey(0)
    pkey, xkey = jax.random.split(key)

    # args.n_classes = 10, len(args.cifar_classifier_indexes) = 2
    #   -> input_size = 2 * 2 * 10 = 40, output_size = 10
    n_classes = 10
    input_size = 2 * 2 * n_classes
    batch = 4

    params = init_params(pkey, input_size, n_classes)
    image = jax.random.normal(xkey, (batch, input_size), jnp.float32)
    input_dict = {"image": image}

    out = forward_dict(params, input_dict)
    logits = jax.block_until_ready(out["prediction"])

    ref = jax.block_until_ready(reference_forward(params, image))
    assert logits.shape == (batch, n_classes), logits.shape
    err = np.max(np.abs(np.asarray(logits) - np.asarray(ref)))
    assert np.allclose(np.asarray(logits), np.asarray(ref), atol=2e-5, rtol=2e-5), err
    print("KERNEL_OK")
</pallas_src>

<mosaic_0001>
module attributes {stable_mosaic.version = 11 : i64} {
  func.func @_mlp_kernel(%arg0: i32, %arg1: memref<8x128xf32, #tpu.memory_space<vmem>>, %arg2: memref<128x128xf32, #tpu.memory_space<vmem>>, %arg3: memref<1x128xf32, #tpu.memory_space<vmem>>, %arg4: memref<128x256xf32, #tpu.memory_space<vmem>>, %arg5: memref<1x256xf32, #tpu.memory_space<vmem>>, %arg6: memref<256x128xf32, #tpu.memory_space<vmem>>, %arg7: memref<1x128xf32, #tpu.memory_space<vmem>>, %arg8: memref<128x128xf32, #tpu.memory_space<vmem>>, %arg9: memref<1x128xf32, #tpu.memory_space<vmem>>, %arg10: memref<8x128xf32, #tpu.memory_space<vmem>>) attributes {dimension_semantics = [#tpu.dimension_semantics<parallel>], iteration_bounds = array<i64: 1>, scalar_prefetch = 0 : i64, scratch_operands = 0 : i64, tpu.core_type = #tpu.core_type<tc>, window_params = [{transform_indices = @transform_0, window_bounds = array<i64: 8, 128>}, {pipeline_mode = #tpu.pipeline_mode<synchronous>, transform_indices = @transform_1, window_bounds = array<i64: 128, 128>}, {pipeline_mode = #tpu.pipeline_mode<synchronous>, transform_indices = @transform_2, window_bounds = array<i64: 1, 128>}, {pipeline_mode = #tpu.pipeline_mode<synchronous>, transform_indices = @transform_3, window_bounds = array<i64: 128, 256>}, {pipeline_mode = #tpu.pipeline_mode<synchronous>, transform_indices = @transform_4, window_bounds = array<i64: 1, 256>}, {pipeline_mode = #tpu.pipeline_mode<synchronous>, transform_indices = @transform_5, window_bounds = array<i64: 256, 128>}, {pipeline_mode = #tpu.pipeline_mode<synchronous>, transform_indices = @transform_6, window_bounds = array<i64: 1, 128>}, {pipeline_mode = #tpu.pipeline_mode<synchronous>, transform_indices = @transform_7, window_bounds = array<i64: 128, 128>}, {pipeline_mode = #tpu.pipeline_mode<synchronous>, transform_indices = @transform_8, window_bounds = array<i64: 1, 128>}, {transform_indices = @transform_9, window_bounds = array<i64: 8, 128>}]} {
    %c0 = arith.constant 0 : index
    %c0_0 = arith.constant 0 : index
    %0 = vector.load %arg1[%c0, %c0_0] : memref<8x128xf32, #tpu.memory_space<vmem>>, vector<8x128xf32>
    %c0_1 = arith.constant 0 : index
    %c0_2 = arith.constant 0 : index
    %1 = vector.load %arg2[%c0_1, %c0_2] : memref<128x128xf32, #tpu.memory_space<vmem>>, vector<128x128xf32>
    %cst = arith.constant dense<0.000000e+00> : vector<8x128xf32>
    %2 = tpu.matmul %0, %1, %cst {dimension_numbers = #tpu.dot_dimension_numbers<[1], [0], [0], [1], [0, 0, 1, 1], [], []>} : vector<8x128xf32>, vector<128x128xf32>, vector<8x128xf32> -> vector<8x128xf32>
    %c0_3 = arith.constant 0 : index
    %c0_4 = arith.constant 0 : index
    %3 = vector.load %arg3[%c0_3, %c0_4] : memref<1x128xf32, #tpu.memory_space<vmem>>, vector<1x128xf32>
    %4 = vector.broadcast %3 : vector<1x128xf32> to vector<8x128xf32>
    %5 = arith.addf %2, %4 : vector<8x128xf32>
    %cst_5 = arith.constant 0.000000e+00 : f32
    %6 = vector.broadcast %cst_5 : f32 to vector<8x128xf32>
    %7 = arith.maximumf %5, %6 : vector<8x128xf32>
    %c0_6 = arith.constant 0 : index
    %c0_7 = arith.constant 0 : index
    %8 = vector.load %arg4[%c0_6, %c0_7] : memref<128x256xf32, #tpu.memory_space<vmem>>, vector<128x256xf32>
    %cst_8 = arith.constant dense<0.000000e+00> : vector<8x256xf32>
    %9 = tpu.matmul %7, %8, %cst_8 {dimension_numbers = #tpu.dot_dimension_numbers<[1], [0], [0], [1], [0, 0, 1, 1], [], []>} : vector<8x128xf32>, vector<128x256xf32>, vector<8x256xf32> -> vector<8x256xf32>
    %c0_9 = arith.constant 0 : index
    %c0_10 = arith.constant 0 : index
    %10 = vector.load %arg5[%c0_9, %c0_10] : memref<1x256xf32, #tpu.memory_space<vmem>>, vector<1x256xf32>
    %11 = vector.broadcast %10 : vector<1x256xf32> to vector<8x256xf32>
    %12 = arith.addf %9, %11 : vector<8x256xf32>
    %cst_11 = arith.constant 0.000000e+00 : f32
    %13 = vector.broadcast %cst_11 : f32 to vector<8x256xf32>
    %14 = arith.maximumf %12, %13 : vector<8x256xf32>
    %c0_12 = arith.constant 0 : index
    %c0_13 = arith.constant 0 : index
    %15 = vector.load %arg6[%c0_12, %c0_13] : memref<256x128xf32, #tpu.memory_space<vmem>>, vector<256x128xf32>
    %cst_14 = arith.constant dense<0.000000e+00> : vector<8x128xf32>
    %16 = tpu.matmul %14, %15, %cst_14 {dimension_numbers = #tpu.dot_dimension_numbers<[1], [0], [0], [1], [0, 0, 1, 1], [], []>} : vector<8x256xf32>, vector<256x128xf32>, vector<8x128xf32> -> vector<8x128xf32>
    %c0_15 = arith.constant 0 : index
    %c0_16 = arith.constant 0 : index
    %17 = vector.load %arg7[%c0_15, %c0_16] : memref<1x128xf32, #tpu.memory_space<vmem>>, vector<1x128xf32>
    %18 = vector.broadcast %17 : vector<1x128xf32> to vector<8x128xf32>
    %19 = arith.addf %16, %18 : vector<8x128xf32>
    %cst_17 = arith.constant 0.000000e+00 : f32
    %20 = vector.broadcast %cst_17 : f32 to vector<8x128xf32>
    %21 = arith.maximumf %19, %20 : vector<8x128xf32>
    %c0_18 = arith.constant 0 : index
    %c0_19 = arith.constant 0 : index
    %22 = vector.load %arg8[%c0_18, %c0_19] : memref<128x128xf32, #tpu.memory_space<vmem>>, vector<128x128xf32>
    %cst_20 = arith.constant dense<0.000000e+00> : vector<8x128xf32>
    %23 = tpu.matmul %21, %22, %cst_20 {dimension_numbers = #tpu.dot_dimension_numbers<[1], [0], [0], [1], [0, 0, 1, 1], [], []>} : vector<8x128xf32>, vector<128x128xf32>, vector<8x128xf32> -> vector<8x128xf32>
    %c0_21 = arith.constant 0 : index
    %c0_22 = arith.constant 0 : index
    %24 = vector.load %arg9[%c0_21, %c0_22] : memref<1x128xf32, #tpu.memory_space<vmem>>, vector<1x128xf32>
    %25 = vector.broadcast %24 : vector<1x128xf32> to vector<8x128xf32>
    %26 = arith.addf %23, %25 : vector<8x128xf32>
    %c0_23 = arith.constant 0 : index
    %c0_24 = arith.constant 0 : index
    %27 = vector.load %arg10[%c0_23, %c0_24] : memref<8x128xf32, #tpu.memory_space<vmem>>, vector<8x128xf32>
    tpu.vector_store %arg10[%c0_23, %c0_24], %26 {strides = array<i32>} : memref<8x128xf32, #tpu.memory_space<vmem>>, vector<8x128xf32>,
    return
  }
  func.func @transform_0(%arg0: i32) -> (i32, i32) {
    %c0_i32 = arith.constant 0 : i32
    %c0_i32_0 = arith.constant 0 : i32
    return %arg0, %c0_i32 : i32, i32
  }
  func.func @transform_1(%arg0: i32) -> (i32, i32) {
    %c0_i32 = arith.constant 0 : i32
    %c0_i32_0 = arith.constant 0 : i32
    %c0_i32_1 = arith.constant 0 : i32
    return %c0_i32, %c0_i32_0 : i32, i32
  }
  func.func @transform_2(%arg0: i32) -> (i32, i32) {
    %c0_i32 = arith.constant 0 : i32
    %c0_i32_0 = arith.constant 0 : i32
    %c0_i32_1 = arith.constant 0 : i32
    return %c0_i32, %c0_i32_0 : i32, i32
  }
  func.func @transform_3(%arg0: i32) -> (i32, i32) {
    %c0_i32 = arith.constant 0 : i32
    %c0_i32_0 = arith.constant 0 : i32
    %c0_i32_1 = arith.constant 0 : i32
    return %c0_i32, %c0_i32_0 : i32, i32
  }
  func.func @transform_4(%arg0: i32) -> (i32, i32) {
    %c0_i32 = arith.constant 0 : i32
    %c0_i32_0 = arith.constant 0 : i32
    %c0_i32_1 = arith.constant 0 : i32
    return %c0_i32, %c0_i32_0 : i32, i32
  }
  func.func @transform_5(%arg0: i32) -> (i32, i32) {
    %c0_i32 = arith.constant 0 : i32
    %c0_i32_0 = arith.constant 0 : i32
    %c0_i32_1 = arith.constant 0 : i32
    return %c0_i32, %c0_i32_0 : i32, i32
  }
  func.func @transform_6(%arg0: i32) -> (i32, i32) {
    %c0_i32 = arith.constant 0 : i32
    %c0_i32_0 = arith.constant 0 : i32
    %c0_i32_1 = arith.constant 0 : i32
    return %c0_i32, %c0_i32_0 : i32, i32
  }
  func.func @transform_7(%arg0: i32) -> (i32, i32) {
    %c0_i32 = arith.constant 0 : i32
    %c0_i32_0 = arith.constant 0 : i32
    %c0_i32_1 = arith.constant 0 : i32
    return %c0_i32, %c0_i32_0 : i32, i32
  }
  func.func @transform_8(%arg0: i32) -> (i32, i32) {
    %c0_i32 = arith.constant 0 : i32
    %c0_i32_0 = arith.constant 0 : i32
    %c0_i32_1 = arith.constant 0 : i32
    return %c0_i32, %c0_i32_0 : i32, i32
  }
  func.func @transform_9(%arg0: i32) -> (i32, i32) {
    %c0_i32 = arith.constant 0 : i32
    %c0_i32_0 = arith.constant 0 : i32
    return %arg0, %c0_i32 : i32, i32
  }
}

</mosaic_0001>

<bundles_post_ra>
// kernel: forward.1
= control target key start
LH: loop header
LB: loop body
LE: loop exit
PB: predicated region body
PF: predicated region fallthrough
CT: control target
= control target key end

     0   :  { %v709_v0 = vmov 0.0|0.0   ;;  %vm710_vm0 = vmmov 0   ;;  %v711_v4 = vmov 0.0   ;;  %s1089_s1 = inlined_call_operand.vmem [shape: f32[128,128], index: 1, kind: input, shape index: {}]   ;;  %s1090_s3 = inlined_call_operand.vmem [shape: f32[128,256], index: 3, kind: input, shape index: {}]   ;;  %s1091_s0 = inlined_call_operand.vmem [shape: f32[8,128], index: 0, kind: input, shape index: {}]   ;;  %s1092_s5 = inlined_call_operand.vmem [shape: f32[256,128], index: 5, kind: input, shape index: {}]   ;;  %s1093_s2 = inlined_call_operand.vmem [shape: f32[1,128], index: 2, kind: input, shape index: {}]   ;;  %s1094_s7 = inlined_call_operand.vmem [shape: f32[128,128], index: 7, kind: input, shape index: {}]   ;;  %s1095_s4 = inlined_call_operand.vmem [shape: f32[1,256], index: 4, kind: input, shape index: {}]   ;;  %s1096_s6 = inlined_call_operand.vmem [shape: f32[1,128], index: 6, kind: input, shape index: {}]   ;;  %s1097_s8 = inlined_call_operand.vmem [shape: f32[1,128], index: 8, kind: input, shape index: {}]   ;;  %s1098_s9 = inlined_call_operand.vmem [shape: f32[8,128], index: 9, kind: output, shape index: {}]  }
   0x1   :  { %594 = vmatprep.subr.bf16.mxu0 %v709_v0  ;;  %v33_v1 = vld [vmem:[%s1089_s1] sm:$0xff]  ;;  %v34_v2 = vld [vmem:[%s1089_s1 + $0x8] sm:$0xff]  ;;  %v35_v3 = vld [vmem:[%s1089_s1 + $0x10] sm:$0xff]  ;;  %556 = vmatprep.mubr.msk.f32.mxu0 %vm710_vm0, %v711_v4 }
   0x2   :  { %v595_v5 = vpack.c.bf16 %v34_v2, %v33_v1  ;;  %v36_v6 = vld [vmem:[%s1089_s1 + $0x18] sm:$0xff]  ;;  %235 = vmatprep.mubr.f32.mxu1 %v711_v4  ;;  %v37_v8 = vld [vmem:[%s1089_s1 + $0x20] sm:$0xff]  ;;  %v38_v9 = vld [vmem:[%s1089_s1 + $0x28] sm:$0xff] }
   0x3   :  { %v598_v7 = vpack.c.bf16 %v36_v6, %v35_v3  ;;  %v128_v10 = vld [vmem:[%s1090_s3 + $0x8] sm:$0xff]  ;;  %v39_v11 = vld [vmem:[%s1089_s1 + $0x30] sm:$0xff]  ;;  %v40_v12 = vld [vmem:[%s1089_s1 + $0x38] sm:$0xff]  ;;  %v601_v16 = vpack.c.bf16 %v38_v9, %v37_v8 }
   0x4   :  { %596 = vmatpush3.bf16.msra.mxu0 %v595_v5  ;;  %v130_v13 = vld [vmem:[%s1090_s3 + $0x18] sm:$0xff]  ;;  %v127_v14 = vld [vmem:[%s1090_s3] sm:$0xff]  ;;  %v129_v15 = vld [vmem:[%s1090_s3 + $0x10] sm:$0xff]  ;;  %v604_v27 = vpack.c.bf16 %v40_v12, %v39_v11 }
   0x5   :  { %597 = vmatprep.subr.bf16.mxu0 %v709_v0  ;;  %v618_v17 = vpack.c.bf16 %v130_v13, %v128_v10  ;;  %v620_v18 = vpack.c.bf16 %v129_v15, %v127_v14  ;;  %v132_v19 = vld [vmem:[%s1090_s3 + $0x28] sm:$0xff]  ;;  %v134_v20 = vld [vmem:[%s1090_s3 + $0x38] sm:$0xff]  ;;  %v131_v21 = vld [vmem:[%s1090_s3 + $0x20] sm:$0xff] }
   0x6   :  { %v622_v22 = vpack.c.bf16 %v134_v20, %v132_v19  ;;  %v133_v23 = vld [vmem:[%s1090_s3 + $0x30] sm:$0xff]  ;;  %v136_v24 = vld [vmem:[%s1090_s3 + $0x48] sm:$0xff]  ;;  %v138_v25 = vld [vmem:[%s1090_s3 + $0x58] sm:$0xff] }
   0x7   :  { %619 = vmatprep.subr.bf16.mxu1 %v618_v17  ;;  %v624_v26 = vpack.c.bf16 %v133_v23, %v131_v21  ;;  %v41_v28 = vld [vmem:[%s1089_s1 + $0x40] sm:$0xff]  ;;  %v626_v29 = vpack.c.bf16 %v138_v25, %v136_v24  ;;  %v137_v31 = vld [vmem:[%s1090_s3 + $0x50] sm:$0xff]  ;;  %v42_v32 = vld [vmem:[%s1089_s1 + $0x48] sm:$0xff] }
   0x8   :  { %599 = vmatpush3.bf16.msra.mxu0 %v598_v7  ;;  %621 = vmatpush1.bf16.msra.mxu1 %v620_v18  ;;  %v135_v30 = vld [vmem:[%s1090_s3 + $0x40] sm:$0xff]  ;;  %v140_v33 = vld [vmem:[%s1090_s3 + $0x68] sm:$0xff]  ;;  %v142_v34 = vld [vmem:[%s1090_s3 + $0x78] sm:$0xff]  ;;  %v607_v36 = vpack.c.bf16 %v42_v32, %v41_v28 }
   0x9   :  { %600 = vmatprep.subr.bf16.mxu0 %v709_v0  ;;  %623 = vmatprep.subr.bf16.mxu1 %v622_v22  ;;  %v628_v35 = vpack.c.bf16 %v137_v31, %v135_v30  ;;  %v43_v37 = vld [vmem:[%s1089_s1 + $0x50] sm:$0xff]  ;;  %v630_v38 = vpack.c.bf16 %v142_v34, %v140_v33  ;;  %v139_v39 = vld [vmem:[%s1090_s3 + $0x60] sm:$0xff]  ;;  %v44_v41 = vld [vmem:[%s1089_s1 + $0x58] sm:$0xff] }
   0xa   :  { %v141_v40 = vld [vmem:[%s1090_s3 + $0x70] sm:$0xff]  ;;  %v144_v42 = vld [vmem:[%s1090_s3 + $0x88] sm:$0xff]  ;;  %v146_v43 = vld [vmem:[%s1090_s3 + $0x98] sm:$0xff]  ;;  %v610_v45 = vpack.c.bf16 %v44_v41, %v43_v37 }
   0xb   :  { %v632_v44 = vpack.c.bf16 %v141_v40, %v139_v39  ;;  %v45_v46 = vld [vmem:[%s1089_s1 + $0x60] sm:$0xff]  ;;  %v634_v47 = vpack.c.bf16 %v146_v43, %v144_v42  ;;  %v145_v49 = vld [vmem:[%s1090_s3 + $0x90] sm:$0xff]  ;;  %v46_v50 = vld [vmem:[%s1089_s1 + $0x68] sm:$0xff] }
   0xc   :  { %602 = vmatpush3.bf16.msra.mxu0 %v601_v16  ;;  %625 = vmatpush1.bf16.msra.mxu1 %v624_v26  ;;  %v143_v48 = vld [vmem:[%s1090_s3 + $0x80] sm:$0xff]  ;;  %v148_v51 = vld [vmem:[%s1090_s3 + $0xa8] sm:$0xff]  ;;  %v150_v52 = vld [vmem:[%s1090_s3 + $0xb8] sm:$0xff]  ;;  %v613_v54 = vpack.c.bf16 %v46_v50, %v45_v46 }
   0xd   :  { %603 = vmatprep.subr.bf16.mxu0 %v709_v0  ;;  %627 = vmatprep.subr.bf16.mxu1 %v626_v29  ;;  %v636_v53 = vpack.c.bf16 %v145_v49, %v143_v48  ;;  %v47_v55 = vld [vmem:[%s1089_s1 + $0x70] sm:$0xff]  ;;  %v638_v56 = vpack.c.bf16 %v150_v52, %v148_v51  ;;  %v147_v57 = vld [vmem:[%s1090_s3 + $0xa0] sm:$0xff]  ;;  %v48_v59 = vld [vmem:[%s1089_s1 + $0x78] sm:$0xff] }
   0xe   :  { %v149_v58 = vld [vmem:[%s1090_s3 + $0xb0] sm:$0xff]  ;;  %v152_v60 = vld [vmem:[%s1090_s3 + $0xc8] sm:$0xff]  ;;  %v154_v61 = vld [vmem:[%s1090_s3 + $0xd8] sm:$0xff]  ;;  %v616_v63 = vpack.c.bf16 %v48_v59, %v47_v55 }
   0xf   :  { %v640_v62 = vpack.c.bf16 %v149_v58, %v147_v57  ;;  %v642_v1 = vpack.c.bf16 %v154_v61, %v152_v60  ;;  %v151_v2 = vld [vmem:[%s1090_s3 + $0xc0] sm:$0xff]  ;;  %v153_v3 = vld [vmem:[%s1090_s3 + $0xd0] sm:$0xff]  ;;  %v156_v7 = vld [vmem:[%s1090_s3 + $0xe8] sm:$0xff] }
  0x10   :  { %605 = vmatpush3.bf16.msra.mxu0 %v604_v27  ;;  %629 = vmatpush1.bf16.msra.mxu1 %v628_v35  ;;  %v644_v5 = vpack.c.bf16 %v153_v3, %v151_v2  ;;  %v32_v6 = vld [vmem:[%s1091_s0] sm:$0xff]  ;;  %v158_v8 = vld [vmem:[%s1090_s3 + $0xf8] sm:$0xff]  ;;  %v157_v11 = vld [vmem:[%s1090_s3 + $0xf0] sm:$0xff] }
  0x11   :  { %606 = vmatprep.subr.bf16.mxu0 %v709_v0  ;;  %631 = vmatprep.subr.bf16.mxu1 %v630_v38  ;;  %v646_v9 = vpack.c.bf16 %v158_v8, %v156_v7  ;;  %v155_v10 = vld [vmem:[%s1090_s3 + $0xe0] sm:$0xff]  ;;  %v261_v14 = vld [vmem:[%s1092_s5 + $0x88] sm:$0xff]  ;;  %v262_v18 = vld [vmem:[%s1092_s5 + $0x90] sm:$0xff] }
  0x12   :  { %v648_v12 = vpack.c.bf16 %v157_v11, %v155_v10  ;;  %v260_v13 = vld [vmem:[%s1092_s5 + $0x80] sm:$0xff]  ;;  %v245_v17 = vld [vmem:[%s1092_s5 + $0x8] sm:$0xff]  ;;  %v263_v19 = vld [vmem:[%s1092_s5 + $0x98] sm:$0xff] }
  0x13   :  { %v244_v15 = vld [vmem:[%s1092_s5] sm:$0xff]  ;;  %v650_v16 = vpack.c.bf16 %v261_v14, %v260_v13  ;;  %v654_v21 = vpack.c.bf16 %v263_v19, %v262_v18  ;;  %v246_v22 = vld [vmem:[%s1092_s5 + $0x10] sm:$0xff]  ;;  %v247_v23 = vld [vmem:[%s1092_s5 + $0x18] sm:$0xff] }
  0x14   :  { %608 = vmatpush3.bf16.msra.mxu0 %v607_v36  ;;  %633 = vmatpush1.bf16.msra.mxu1 %v632_v44  ;;  %v652_v20 = vpack.c.bf16 %v245_v17, %v244_v15  ;;  %v264_v24 = vld [vmem:[%s1092_s5 + $0xa0] sm:$0xff]  ;;  %v265_v25 = vld [vmem:[%s1092_s5 + $0xa8] sm:$0xff]  ;;  %v656_v26 = vpack.c.bf16 %v247_v23, %v246_v22  ;;  %v266_v30 = vld [vmem:[%s1092_s5 + $0xb0] sm:$0xff] }
  0x15   :  { %609 = vmatprep.subr.bf16.mxu0 %v709_v0  ;;  %635 = vmatprep.subr.bf16.mxu1 %v634_v47  ;;  %v658_v27 = vpack.c.bf16 %v265_v25, %v264_v24  ;;  %v248_v28 = vld [vmem:[%s1092_s5 + $0x20] sm:$0xff]  ;;  %v249_v29 = vld [vmem:[%s1092_s5 + $0x28] sm:$0xff]  ;;  %v267_v31 = vld [vmem:[%s1092_s5 + $0xb8] sm:$0xff] }
  0x16   :  { %v660_v32 = vpack.c.bf16 %v249_v29, %v248_v28  ;;  %v662_v33 = vpack.c.bf16 %v267_v31, %v266_v30  ;;  %v250_v34 = vld [vmem:[%s1092_s5 + $0x30] sm:$0xff]  ;;  %v251_v35 = vld [vmem:[%s1092_s5 + $0x38] sm:$0xff]  ;;  %v268_v36 = vld [vmem:[%s1092_s5 + $0xc0] sm:$0xff] }
  0x17   :  { %v269_v37 = vld [vmem:[%s1092_s5 + $0xc8] sm:$0xff]  ;;  %v664_v38 = vpack.c.bf16 %v251_v35, %v250_v34  ;;  %v252_v40 = vld [vmem:[%s1092_s5 + $0x40] sm:$0xff]  ;;  %v270_v42 = vld [vmem:[%s1092_s5 + $0xd0] sm:$0xff] }
  0x18   :  { %611 = vmatpush3.bf16.msra.mxu0 %v610_v45  ;;  %637 = vmatpush1.bf16.msra.mxu1 %v636_v53  ;;  %v666_v39 = vpack.c.bf16 %v269_v37, %v268_v36  ;;  %v253_v41 = vld [vmem:[%s1092_s5 + $0x48] sm:$0xff]  ;;  %v271_v43 = vld [vmem:[%s1092_s5 + $0xd8] sm:$0xff]  ;;  %v254_v46 = vld [vmem:[%s1092_s5 + $0x50] sm:$0xff] }
  0x19   :  { %612 = vmatprep.subr.bf16.mxu0 %v709_v0  ;;  %639 = vmatprep.subr.bf16.mxu1 %v638_v56  ;;  %v668_v44 = vpack.c.bf16 %v253_v41, %v252_v40  ;;  %v670_v45 = vpack.c.bf16 %v271_v43, %v270_v42  ;;  %v255_v47 = vld [vmem:[%s1092_s5 + $0x58] sm:$0xff]  ;;  %v272_v48 = vld [vmem:[%s1092_s5 + $0xe0] sm:$0xff]  ;;  %v273_v49 = vld [vmem:[%s1092_s5 + $0xe8] sm:$0xff] }
  0x1a   :  { %v672_v50 = vpack.c.bf16 %v255_v47, %v254_v46  ;;  %v674_v51 = vpack.c.bf16 %v273_v49, %v272_v48  ;;  %v452_v52 = vld [vmem:[%s1093_s2] ss:$0 sm:$0xff]  ;;  %v257_v58 = vld [vmem:[%s1092_s5 + $0x68] sm:$0xff]  ;;  %v274_v60 = vld [vmem:[%s1092_s5 + $0xf0] sm:$0xff] }
  0x1b   :  { %v256_v57 = vld [vmem:[%s1092_s5 + $0x60] sm:$0xff]  ;;  %v275_v61 = vld [vmem:[%s1092_s5 + $0xf8] sm:$0xff]  ;;  %v355_v3 = vld [vmem:[%s1094_s7 + $0x8] sm:$0xff] }
  0x1c   :  { %614 = vmatpush3.bf16.msra.mxu0 %v613_v54  ;;  %641 = vmatpush1.bf16.msra.mxu1 %v640_v62  ;;  %v676_v59 = vpack.c.bf16 %v257_v58, %v256_v57  ;;  %v678_v62 = vpack.c.bf16 %v275_v61, %v274_v60  ;;  %v354_v2 = vld [vmem:[%s1094_s7] sm:$0xff]  ;;  %v357_v7 = vld [vmem:[%s1094_s7 + $0x18] sm:$0xff]  ;;  %v359_v10 = vld [vmem:[%s1094_s7 + $0x28] sm:$0xff] }
  0x1d   :  { %615 = vmatprep.subr.bf16.mxu0 %v709_v0  ;;  %643 = vmatprep.subr.bf16.mxu1 %v642_v1  ;;  %v361_v13 = vld [vmem:[%s1094_s7 + $0x38] sm:$0xff]  ;;  %v362_v15 = vld [vmem:[%s1094_s7 + $0x40] sm:$0xff]  ;;  %v364_v18 = vld [vmem:[%s1094_s7 + $0x50] sm:$0xff] }
  0x1e   :  { %v365_v19 = vld [vmem:[%s1094_s7 + $0x58] sm:$0xff]  ;;  %v159_v24 = vld [vmem:[%s1095_s4] sm:$0x3]  ;;  %v367_v35 = vld [vmem:[%s1094_s7 + $0x68] sm:$0xff] }
  0x1f   :  { %v366_v34 = vld [vmem:[%s1094_s7 + $0x60] sm:$0xff]  ;;  %v368_v37 = vld [vmem:[%s1094_s7 + $0x70] sm:$0xff] }
  0x20   :  { %617 = vmatpush3.bf16.msra.mxu0 %v616_v63  ;;  %645 = vmatpush1.bf16.msra.mxu1 %v644_v5  ;;  %v259_v63 = vld [vmem:[%s1092_s5 + $0x78] sm:$0xff]  ;;  %v356_v5 = vld [vmem:[%s1094_s7 + $0x10] sm:$0xff]  ;;  %v701_v36 = vpack.c.bf16 %v367_v35, %v366_v34  ;;  %v453_v41 = vld [vmem:[%s1096_s6] ss:$0 sm:$0xff] }
  0x21   :  { %647 = vmatprep.subr.bf16.mxu1 %v646_v9  ;;  %651 = vmatprep.subr.bf16.mxu0 %v650_v16  ;;  %v686_v8 = vpack.c.bf16 %v357_v7, %v356_v5  ;;  %v358_v9 = vld [vmem:[%s1094_s7 + $0x20] sm:$0xff]  ;;  %v363_v16 = vld [vmem:[%s1094_s7 + $0x48] sm:$0xff] }
  0x22   :  { %v689_v11 = vpack.c.bf16 %v359_v10, %v358_v9  ;;  %v695_v17 = vpack.c.bf16 %v363_v16, %v362_v15 }
  0x23   :  { %557 = vmatmul.mubr.f32.vlgmr.msra.gmra.mrb[0].mxu0 %v32_v6  ;;  %v683_v6 = vpack.c.bf16 %v355_v3, %v354_v2 }
  0x24   :  { %649 = vmatpush1.bf16.msra.mxu1 %v648_v12  ;;  %653 = vmatpush3.bf16.msra.mxu0 %v652_v20  ;;  %v360_v12 = vld [vmem:[%s1094_s7 + $0x30] sm:$0xff]  ;;  %v698_v20 = vpack.c.bf16 %v365_v19, %v364_v18 }
  0x25   :  { %682 = vmatprep.subr.bf16.mxu1 %v709_v0  ;;  %655 = vmatprep.subr.bf16.mxu0 %v654_v21  ;;  %v692_v14 = vpack.c.bf16 %v361_v13, %v360_v12  ;;  %v161_v21 = vlaneseq }
  0x27   :  { %v162_v22 = vshrl.u32 %v161_v21, 7 }
  0x28   :  { %657 = vmatpush3.bf16.msra.mxu0 %v656_v26 }
  0x29   :  { %659 = vmatprep.subr.bf16.mxu0 %v658_v27  ;;  %v163_v23 = vsub.s32 0, %v162_v22  ;;  %v167_v25 = vsub.s32 1, %v162_v22 }
  0x2b   :  { %v164_v26 = vrot.slane %v159_v24, %v163_v23  ;;  %v168_v27 = vrot.slane %v159_v24, %v167_v25 }
  0x2c   :  { %661 = vmatpush3.bf16.msra.mxu0 %v660_v32 }
  0x2d   :  { %663 = vmatprep.subr.bf16.mxu0 %v662_v33 }
  0x30   :  { %665 = vmatpush3.bf16.msra.mxu0 %v664_v38  ;;  %v369_v38 = vld [vmem:[%s1094_s7 + $0x78] sm:$0xff] }
  0x31   :  { %667 = vmatprep.subr.bf16.mxu0 %v666_v39  ;;  %v704_v39 = vpack.c.bf16 %v369_v38, %v368_v37 }
  0x34   :  { %669 = vmatpush3.bf16.msra.mxu0 %v668_v44 }
  0x35   :  { %671 = vmatprep.subr.bf16.mxu0 %v670_v45 }
  0x38   :  { %673 = vmatpush3.bf16.msra.mxu0 %v672_v50 }
  0x39   :  { %675 = vmatprep.subr.bf16.mxu0 %v674_v51 }
  0x3c   :  { %677 = vmatpush3.bf16.msra.mxu0 %v676_v59 }
  0x3d   :  { %679 = vmatprep.subr.bf16.mxu0 %v678_v62 }
  0xf6   :  { %v122_v53 = vpop.f32.mrb[0].mxu0 }
  0xf7   :  { %v123_v54 = vadd.f32 %v452_v52, %v122_v53  ;;  %v558_v55 = vpop.f32.mrb[1].mxu0 }
  0xf9   :  { %v126_v56 = vmax.f32 %v123_v54, 0.0 }
  0xfb   :  { %236 = vmatmul.mubr.f32.vlgmr.msra.gmra.mrb[0].mxu1 %v126_v56 }
  0xfc   :  { %591 = vmatprep.mubr.msk.f32.mxu1 %vm710_vm0, %v711_v4  ;;  %v258_v4 = vld [vmem:[%s1092_s5 + $0x70] sm:$0xff]  ;;  %684 = vmatpush3.bf16.msra.mxu1 %v683_v6 }
  0xfd   :  { %v680_v1 = vpack.c.bf16 %v259_v63, %v258_v4  ;;  %685 = vmatprep.subr.bf16.mxu1 %v709_v0 }
  0xff   :  { %681 = vmatpush3.bf16.msra.mxu0 %v680_v1 }
 0x100   :  { %687 = vmatpush3.bf16.msra.mxu1 %v686_v8 }
 0x101   :  { %688 = vmatprep.subr.bf16.mxu1 %v709_v0 }
 0x104   :  { %690 = vmatpush3.bf16.msra.mxu1 %v689_v11 }
 0x105   :  { %691 = vmatprep.subr.bf16.mxu1 %v709_v0 }
 0x108   :  { %693 = vmatpush3.bf16.msra.mxu1 %v692_v14 }
 0x109   :  { %694 = vmatprep.subr.bf16.mxu1 %v709_v0 }
 0x10c   :  { %696 = vmatpush3.bf16.msra.mxu1 %v695_v17 }
 0x10d   :  { %697 = vmatprep.subr.bf16.mxu1 %v709_v0 }
 0x110   :  { %699 = vmatpush3.bf16.msra.mxu1 %v698_v20 }
 0x111   :  { %700 = vmatprep.subr.bf16.mxu1 %v709_v0 }
 0x114   :  { %702 = vmatpush3.bf16.msra.mxu1 %v701_v36 }
 0x115   :  { %703 = vmatprep.subr.bf16.mxu1 %v709_v0  ;;  %v454_v0 = vld [vmem:[%s1097_s8] ss:$0 sm:$0xff] }
 0x118   :  { %705 = vmatpush3.bf16.msra.mxu1 %v704_v39 }
 0x1ce   :  { %v237_v28 = vpop.f32.mrb[0].mxu1 }
 0x1cf   :  { %v238_v29 = vadd.f32 %v237_v28, %v164_v26  ;;  %v239_v30 = vpop.f32.mrb[1].mxu1 }
 0x1d0   :  { %v240_v31 = vadd.f32 %v239_v30, %v168_v27 }
 0x1d1   :  { %v242_v33 = vmax.f32 %v238_v29, 0.0 }
 0x1d2   :  { %v243_v32 = vmax.f32 %v240_v31, 0.0 }
 0x1d4   :  { %347 = vmatprep.mubr.f32.mxu0 %v243_v32 }
 0x1d5   :  { %348 = vmatmul.mubr.f32.vlgmr.msra.gmra.mrb[2].mxu0 %v242_v33 }
 0x2a8   :  { %v504_v40 = vpop.f32.mrb[2].mxu0 }
 0x2a9   :  { %v505_v42 = vpop.f32.mrb[3].mxu0 }
 0x2aa   :  { %v506_v43 = vadd.f32 %v505_v42, %v504_v40 }
 0x2ac   :  { %v350_v44 = vadd.f32 %v506_v43, %v453_v41 }
 0x2ae   :  { %v353_v45 = vmax.f32 %v350_v44, 0.0 }
 0x2b0   :  { %592 = vmatmul.mubr.f32.vlgmr.msra.gmra.mrb[2].mxu1 %v353_v45 }
 0x383   :  { %v443_v46 = vpop.f32.mrb[2].mxu1 }
 0x384   :  { %v444_v47 = vadd.f32 %v454_v0, %v443_v46  ;;  %v593_v48 = vpop.f32.mrb[3].mxu1 }
 0x386   :  { %447 = vst [vmem:[%s1098_s9] sm:$0xff] %v444_v47 }

</bundles_post_ra>
